<compile_context>
chip_gen: v5e
topology: v5e:2x2
jax: 0.10.0
libtpu: 0.0.40
codegen_flags: <defaults>
</compile_context>

<pallas_src>
import functools

import jax
import jax.numpy as jnp
from jax.experimental import pallas as pl
from jax.experimental.pallas import tpu as pltpu


ACT_DTYPE = jnp.float32   # set to jnp.bfloat16 to halve HBM traffic (MXU accum stays f32)
TM_MAX = 8192             # lane tile for the spatial/M axis (multiple of 128)


def _round_up(x, m):
    return (x + m - 1) // m * m


def _choose_tile(m):
    tm = min(TM_MAX, _round_up(m, 128))
    return tm, _round_up(m, tm)


# ----------------------------- Pallas kernels --------------------------------

def _cmatmul_kernel(a_ref, w_ref, b_ref, o_ref, *, apply_relu):
    # one packed complex matmul: (2Cout, 2K) @ (2K, TM) on the MXU, f32 accum
    acc = jnp.dot(w_ref[0], a_ref[0], preferred_element_type=jnp.float32)
    acc = acc + b_ref[...]                       # (2Cout, 1) broadcasts over lanes
    if apply_relu:                               # complex_relu: relu(real), relu(imag)
        acc = jnp.maximum(acc, 0.0)
    o_ref[0] = acc.astype(o_ref.dtype)


def _cmatmul_skip_kernel(a_ref, w_ref, b_ref, s_ref, o_ref, *, apply_relu):
    acc = jnp.dot(w_ref[0], a_ref[0], preferred_element_type=jnp.float32)
    acc = acc + b_ref[...]
    if apply_relu:
        acc = jnp.maximum(acc, 0.0)
    acc = acc + s_ref[0].astype(jnp.float32)     # fused U-Net skip addition
    o_ref[0] = acc.astype(o_ref.dtype)


def packed_complex_matmul(a, w, b, skip=None, *, apply_relu, tm, out_dtype):
    """a: (G, 2Kp, Mp)  w: (G, 2Cout, 2Kp)  b: (2Cout, 1)  skip: (G, 2Cout, Mp) | None."""
    g_dim, k2, mp = a.shape
    c2 = w.shape[1]
    grid = (g_dim, mp // tm)
    a_spec = pl.BlockSpec((1, k2, tm), lambda g, m: (g, 0, m))
    w_spec = pl.BlockSpec((1, c2, k2), lambda g, m: (g, 0, 0))
    b_spec = pl.BlockSpec((c2, 1), lambda g, m: (0, 0))
    o_spec = pl.BlockSpec((1, c2, tm), lambda g, m: (g, 0, m))
    cparams = pltpu.CompilerParams(
        dimension_semantics=("parallel", "parallel"),
        vmem_limit_bytes=64 * 1024 * 1024)
    out_shape = jax.ShapeDtypeStruct((g_dim, c2, mp), out_dtype)
    if skip is None:
        return pl.pallas_call(
            functools.partial(_cmatmul_kernel, apply_relu=apply_relu),
            out_shape=out_shape, grid=grid,
            in_specs=[a_spec, w_spec, b_spec], out_specs=o_spec,
            compiler_params=cparams,
        )(a, w, b)
    s_spec = pl.BlockSpec((1, c2, tm), lambda g, m: (g, 0, m))
    return pl.pallas_call(
        functools.partial(_cmatmul_skip_kernel, apply_relu=apply_relu),
        out_shape=out_shape, grid=grid,
        in_specs=[a_spec, w_spec, b_spec, s_spec], out_specs=o_spec,
        compiler_params=cparams,
    )(a, w, b, skip)


# ----------------------------- conv glue --------------------------------------

def _im2col(x, kh, kw, stride, pads):
    # x: (2C, N, H, W) -> (2C, kh*kw, N, Ho, Wo)
    pt, pb, pl_, pr_ = pads
    _, _, h, w = x.shape
    xp = jnp.pad(x, ((0, 0), (0, 0), (pt, pb), (pl_, pr_)))
    ho = (h + pt + pb - kh) // stride + 1
    wo = (w + pl_ + pr_ - kw) // stride + 1
    taps = []
    for i in range(kh):
        for j in range(kw):
            taps.append(xp[:, :, i:i + stride * (ho - 1) + 1:stride,
                               j:j + stride * (wo - 1) + 1:stride])
    return jnp.stack(taps, axis=1), ho, wo


def _patches_to_a(cols, cin, m, kp, mp):
    # cols: (2*Cin, T, N, Ho, Wo) -> A (2*Kp, Mp); rows = [real patches ; imag patches]
    t = cols.shape[1]
    a = cols.reshape(2, cin * t, m)
    a = jnp.pad(a, ((0, 0), (0, kp - cin * t), (0, mp - m)))
    return a.reshape(2 * kp, mp)


def _pack_w(wr2d, wi2d, kp):
    # (Cout, K) x2 -> (2*Cout, 2*Kp) = [[Wr, -Wi], [Wi, Wr]]
    cout, k = wr2d.shape
    wr2d = jnp.pad(wr2d, ((0, 0), (0, kp - k)))
    wi2d = jnp.pad(wi2d, ((0, 0), (0, kp - k)))
    return jnp.concatenate(
        [jnp.concatenate([wr2d, -wi2d], axis=1),
         jnp.concatenate([wi2d, wr2d], axis=1)], axis=0)


def _pack_b(br, bi):
    # apply_complex bias fold: real gets (br - bi), imag gets (br + bi)
    return jnp.concatenate([br - bi, br + bi]).reshape(-1, 1).astype(jnp.float32)


def complex_conv2d_down(x, params, *, apply_relu=True):
    # ComplexConv2d(cin, cout, 3, stride=2, padding=1) (+ complex_relu)
    wr, wi, br, bi = params                      # (Cout, Cin, 3, 3), (Cout,)
    cout, cin, kh, kw = wr.shape
    _, n, _, _ = x.shape
    cols, ho, wo = _im2col(x, kh, kw, stride=2, pads=(1, 1, 1, 1))
    m = n * ho * wo
    k = cin * kh * kw
    kp = _round_up(k, 8)
    tm, mp = _choose_tile(m)
    a = _patches_to_a(cols, cin, m, kp, mp)[None].astype(ACT_DTYPE)
    wp = _pack_w(wr.reshape(cout, k), wi.reshape(cout, k), kp)[None].astype(ACT_DTYPE)
    bp = _pack_b(br, bi)
    out = packed_complex_matmul(a, wp, bp, apply_relu=apply_relu, tm=tm,
                                out_dtype=ACT_DTYPE)
    return out[0, :, :m].reshape(2 * cout, n, ho, wo)


# Sub-pixel decomposition of ConvTranspose2d(k=4, stride=2, padding=1):
# output row parity a in {0,1} at position 2*i+a only touches input rows
# {i-1, i} (a=0, kernel rows [3, 1]) or {i, i+1} (a=1, kernel rows [2, 0]);
# same for columns.  _PHASE_TAPS[a] lists the kernel taps in input-tap order.
_PHASE_TAPS = ((3, 1), (2, 0))


def complex_conv_transpose2d_up(x, params, *, apply_relu, skip=None,
                                out_dtype=None):
    wr, wi, br, bi = params                      # (Cin, Cout, 4, 4), (Cout,)
    cin, cout, _, _ = wr.shape
    _, n, h, w = x.shape
    k = cin * 4
    kp = _round_up(k, 8)
    m = n * h * w
    tm, mp = _choose_tile(m)
    a_list, w_list = [], []
    for pa in range(2):
        for pb in range(2):
            pads = (1 - pa, pa, 1 - pb, pb)      # phase 0: pad before, phase 1: pad after
            cols, _, _ = _im2col(x, 2, 2, stride=1, pads=pads)
            a_list.append(_patches_to_a(cols, cin, m, kp, mp))
            wsr = wr[:, :, list(_PHASE_TAPS[pa]), :][:, :, :, list(_PHASE_TAPS[pb])]
            wsi = wi[:, :, list(_PHASE_TAPS[pa]), :][:, :, :, list(_PHASE_TAPS[pb])]
            w_list.append(_pack_w(wsr.transpose(1, 0, 2, 3).reshape(cout, k),
                                  wsi.transpose(1, 0, 2, 3).reshape(cout, k), kp))
    a = jnp.stack(a_list).astype(ACT_DTYPE)      # (4, 2Kp, Mp)
    wp = jnp.stack(w_list).astype(ACT_DTYPE)     # (4, 2Cout, 2Kp)
    bp = _pack_b(br, bi)
    skip_p = None
    if skip is not None:
        # phase-split the skip so the U-Net add fuses into the kernel epilogue
        sp = skip.reshape(2 * cout, n, h, 2, w, 2).transpose(3, 5, 0, 1, 2, 4)
        sp = sp.reshape(4, 2 * cout, m)
        skip_p = jnp.pad(sp, ((0, 0), (0, 0), (0, mp - m))).astype(ACT_DTYPE)
    if out_dtype is None:
        out_dtype = ACT_DTYPE
    out = packed_complex_matmul(a, wp, bp, skip_p, apply_relu=apply_relu,
                                tm=tm, out_dtype=out_dtype)
    # interleave the 4 phases back to full resolution
    out = out[:, :, :m].reshape(2, 2, 2 * cout, n, h, w)
    out = out.transpose(2, 3, 4, 0, 5, 1).reshape(2 * cout, n, 2 * h, 2 * w)
    return out


# ----------------------------- net6 -------------------------------------------

def _init_complex_conv(key, cout, cin, k, transpose=False):
    keys = jax.random.split(key, 4)
    fan_in = (cin if not transpose else cout) * k * k
    bound = 1.0 / float(fan_in) ** 0.5
    wshape = (cin, cout, k, k) if transpose else (cout, cin, k, k)
    wr = jax.random.uniform(keys[0], wshape, jnp.float32, -bound, bound)
    wi = jax.random.uniform(keys[1], wshape, jnp.float32, -bound, bound)
    br = jax.random.uniform(keys[2], (cout,), jnp.float32, -bound, bound)
    bi = jax.random.uniform(keys[3], (cout,), jnp.float32, -bound, bound)
    return wr, wi, br, bi


def init_net6_params(seed=42):
    key = jax.random.PRNGKey(seed)
    k = jax.random.split(key, 6)
    return {
        "down1": _init_complex_conv(k[0], 4, 1, 3),
        "down2": _init_complex_conv(k[1], 8, 4, 3),
        "down3": _init_complex_conv(k[2], 16, 8, 3),
        "up3": _init_complex_conv(k[3], 8, 16, 4, transpose=True),
        "up2": _init_complex_conv(k[4], 4, 8, 4, transpose=True),
        "up1": _init_complex_conv(k[5], 1, 4, 4, transpose=True),
    }


def net6_forward(params, xr, xi):
    # xr, xi: (N, Cin, H, W) real/imag parts of the complex NCHW input.
    x = jnp.concatenate([xr, xi], axis=1).transpose(1, 0, 2, 3)   # (2C, N, H, W)
    x = x.astype(ACT_DTYPE)
    out1 = complex_conv2d_down(x, params["down1"])                # Down4(1,4)
    out2 = complex_conv2d_down(out1, params["down2"])             # Down4(4,8)
    out3 = complex_conv2d_down(out2, params["down3"])             # Down4(8,16)
    u3 = complex_conv_transpose2d_up(out3, params["up3"],         # Up4(16,8) + skip out2
                                     apply_relu=True, skip=out2)
    u2 = complex_conv_transpose2d_up(u3, params["up2"],           # Up4(8,4) + skip out1
                                     apply_relu=True, skip=out1)
    u1 = complex_conv_transpose2d_up(u2, params["up1"],           # Up5(4,1), no relu
                                     apply_relu=False, out_dtype=jnp.float32)
    # torch.squeeze(out20); torch.atan2(out20.real, out20.imag)
    # TODO(synk): atan2 kept as a tiny plain-JAX epilogue (not relying on a Mosaic
    # atan2 lowering); fusing it into the final kernel would save one HBM pass.
    holophase = jnp.arctan2(u1[0], u1[1])        # (N, H, W)
    return jnp.squeeze(holophase)


# ----------------------------- main --------------------------------------------

if __name__ == "__main__":
    params = init_net6_params()

    # small input consistent with the module: complex NCHW (1, 1, 32, 32)
    key = jax.random.PRNGKey(0)
    kr, ki = jax.random.split(key)
    xr = jax.random.normal(kr, (1, 1, 32, 32), jnp.float32)
    xi = jax.random.normal(ki, (1, 1, 32, 32), jnp.float32)

    holophase = jax.jit(net6_forward)(params, xr, xi)
    jax.block_until_ready(holophase)
    assert holophase.shape == (32, 32), holophase.shape
    print("KERNEL_OK")
</pallas_src>

<mosaic_0001>
module attributes {stable_mosaic.version = 11 : i64} {
  func.func @_cmatmul_kernel(%arg0: i32, %arg1: i32, %arg2: memref<1x32x256xf32, #tpu.memory_space<vmem>>, %arg3: memref<1x8x32xf32, #tpu.memory_space<vmem>>, %arg4: memref<8x1xf32, #tpu.memory_space<vmem>>, %arg5: memref<1x8x256xf32, #tpu.memory_space<vmem>>) attributes {dimension_semantics = [#tpu.dimension_semantics<parallel>, #tpu.dimension_semantics<parallel>], iteration_bounds = array<i64: 1, 1>, scalar_prefetch = 0 : i64, scratch_operands = 0 : i64, tpu.core_type = #tpu.core_type<tc>, window_params = [{transform_indices = @transform_0, window_bounds = array<i64: 1, 32, 256>}, {transform_indices = @transform_1, window_bounds = array<i64: 1, 8, 32>}, {pipeline_mode = #tpu.pipeline_mode<synchronous>, transform_indices = @transform_2, window_bounds = array<i64: 8, 1>}, {transform_indices = @transform_3, window_bounds = array<i64: 1, 8, 256>}]} {
    %c0 = arith.constant 0 : index
    %c0_0 = arith.constant 0 : index
    %c0_1 = arith.constant 0 : index
    %0 = vector.load %arg3[%c0, %c0_0, %c0_1] : memref<1x8x32xf32, #tpu.memory_space<vmem>>, vector<1x8x32xf32>
    %1 = vector.shape_cast %0 : vector<1x8x32xf32> to vector<8x32xf32>
    %c0_2 = arith.constant 0 : index
    %c0_3 = arith.constant 0 : index
    %c0_4 = arith.constant 0 : index
    %2 = vector.load %arg2[%c0_2, %c0_3, %c0_4] : memref<1x32x256xf32, #tpu.memory_space<vmem>>, vector<1x32x256xf32>
    %3 = vector.shape_cast %2 : vector<1x32x256xf32> to vector<32x256xf32>
    %cst = arith.constant dense<0.000000e+00> : vector<8x256xf32>
    %4 = tpu.matmul %1, %3, %cst {dimension_numbers = #tpu.dot_dimension_numbers<[1], [0], [0], [1], [0, 0, 1, 1], [], []>} : vector<8x32xf32>, vector<32x256xf32>, vector<8x256xf32> -> vector<8x256xf32>
    %c0_5 = arith.constant 0 : index
    %c0_6 = arith.constant 0 : index
    %5 = vector.load %arg4[%c0_5, %c0_6] : memref<8x1xf32, #tpu.memory_space<vmem>>, vector<8x1xf32>
    %6 = vector.broadcast %5 : vector<8x1xf32> to vector<8x256xf32>
    %7 = arith.addf %4, %6 : vector<8x256xf32>
    %cst_7 = arith.constant 0.000000e+00 : f32
    %8 = vector.broadcast %cst_7 : f32 to vector<8x256xf32>
    %9 = arith.maximumf %7, %8 : vector<8x256xf32>
    %c0_8 = arith.constant 0 : index
    %c0_9 = arith.constant 0 : index
    %c0_10 = arith.constant 0 : index
    %10 = vector.load %arg5[%c0_8, %c0_9, %c0_10] : memref<1x8x256xf32, #tpu.memory_space<vmem>>, vector<1x8x256xf32>
    %11 = vector.shape_cast %10 : vector<1x8x256xf32> to vector<8x256xf32>
    %12 = vector.shape_cast %9 : vector<8x256xf32> to vector<1x8x256xf32>
    tpu.vector_store %arg5[%c0_8, %c0_9, %c0_10], %12 {strides = array<i32>} : memref<1x8x256xf32, #tpu.memory_space<vmem>>, vector<1x8x256xf32>,
    return
  }
  func.func @transform_0(%arg0: i32, %arg1: i32) -> (i32, i32, i32) {
    %c0_i32 = arith.constant 0 : i32
    %c0_i32_0 = arith.constant 0 : i32
    return %arg0, %c0_i32, %arg1 : i32, i32, i32
  }
  func.func @transform_1(%arg0: i32, %arg1: i32) -> (i32, i32, i32) {
    %c0_i32 = arith.constant 0 : i32
    %c0_i32_0 = arith.constant 0 : i32
    %c0_i32_1 = arith.constant 0 : i32
    return %arg0, %c0_i32, %c0_i32_0 : i32, i32, i32
  }
  func.func @transform_2(%arg0: i32, %arg1: i32) -> (i32, i32) {
    %c0_i32 = arith.constant 0 : i32
    %c0_i32_0 = arith.constant 0 : i32
    %c0_i32_1 = arith.constant 0 : i32
    return %c0_i32, %c0_i32_0 : i32, i32
  }
  func.func @transform_3(%arg0: i32, %arg1: i32) -> (i32, i32, i32) {
    %c0_i32 = arith.constant 0 : i32
    %c0_i32_0 = arith.constant 0 : i32
    return %arg0, %c0_i32, %arg1 : i32, i32, i32
  }
}

module attributes {stable_mosaic.version = 11 : i64} {
  func.func @_cmatmul_kernel(%arg0: i32, %arg1: i32, %arg2: memref<1x80x128xf32, #tpu.memory_space<vmem>>, %arg3: memref<1x16x80xf32, #tpu.memory_space<vmem>>, %arg4: memref<16x1xf32, #tpu.memory_space<vmem>>, %arg5: memref<1x16x128xf32, #tpu.memory_space<vmem>>) attributes {dimension_semantics = [#tpu.dimension_semantics<parallel>, #tpu.dimension_semantics<parallel>], iteration_bounds = array<i64: 1, 1>, scalar_prefetch = 0 : i64, scratch_operands = 0 : i64, tpu.core_type = #tpu.core_type<tc>, window_params = [{transform_indices = @transform_0, window_bounds = array<i64: 1, 80, 128>}, {transform_indices = @transform_1, window_bounds = array<i64: 1, 16, 80>}, {pipeline_mode = #tpu.pipeline_mode<synchronous>, transform_indices = @transform_2, window_bounds = array<i64: 16, 1>}, {transform_indices = @transform_3, window_bounds = array<i64: 1, 16, 128>}]} {
    %c0 = arith.constant 0 : index
    %c0_0 = arith.constant 0 : index
    %c0_1 = arith.constant 0 : index
    %0 = vector.load %arg3[%c0, %c0_0, %c0_1] : memref<1x16x80xf32, #tpu.memory_space<vmem>>, vector<1x16x80xf32>
    %1 = vector.shape_cast %0 : vector<1x16x80xf32> to vector<16x80xf32>
    %c0_2 = arith.constant 0 : index
    %c0_3 = arith.constant 0 : index
    %c0_4 = arith.constant 0 : index
    %2 = vector.load %arg2[%c0_2, %c0_3, %c0_4] : memref<1x80x128xf32, #tpu.memory_space<vmem>>, vector<1x80x128xf32>
    %3 = vector.shape_cast %2 : vector<1x80x128xf32> to vector<80x128xf32>
    %cst = arith.constant dense<0.000000e+00> : vector<16x128xf32>
    %4 = tpu.matmul %1, %3, %cst {dimension_numbers = #tpu.dot_dimension_numbers<[1], [0], [0], [1], [0, 0, 1, 1], [], []>} : vector<16x80xf32>, vector<80x128xf32>, vector<16x128xf32> -> vector<16x128xf32>
    %c0_5 = arith.constant 0 : index
    %c0_6 = arith.constant 0 : index
    %5 = vector.load %arg4[%c0_5, %c0_6] : memref<16x1xf32, #tpu.memory_space<vmem>>, vector<16x1xf32>
    %6 = vector.broadcast %5 : vector<16x1xf32> to vector<16x128xf32>
    %7 = arith.addf %4, %6 : vector<16x128xf32>
    %cst_7 = arith.constant 0.000000e+00 : f32
    %8 = vector.broadcast %cst_7 : f32 to vector<16x128xf32>
    %9 = arith.maximumf %7, %8 : vector<16x128xf32>
    %c0_8 = arith.constant 0 : index
    %c0_9 = arith.constant 0 : index
    %c0_10 = arith.constant 0 : index
    %10 = vector.load %arg5[%c0_8, %c0_9, %c0_10] : memref<1x16x128xf32, #tpu.memory_space<vmem>>, vector<1x16x128xf32>
    %11 = vector.shape_cast %10 : vector<1x16x128xf32> to vector<16x128xf32>
    %12 = vector.shape_cast %9 : vector<16x128xf32> to vector<1x16x128xf32>
    tpu.vector_store %arg5[%c0_8, %c0_9, %c0_10], %12 {strides = array<i32>} : memref<1x16x128xf32, #tpu.memory_space<vmem>>, vector<1x16x128xf32>,
    return
  }
  func.func @transform_0(%arg0: i32, %arg1: i32) -> (i32, i32, i32) {
    %c0_i32 = arith.constant 0 : i32
    %c0_i32_0 = arith.constant 0 : i32
    return %arg0, %c0_i32, %arg1 : i32, i32, i32
  }
  func.func @transform_1(%arg0: i32, %arg1: i32) -> (i32, i32, i32) {
    %c0_i32 = arith.constant 0 : i32
    %c0_i32_0 = arith.constant 0 : i32
    %c0_i32_1 = arith.constant 0 : i32
    return %arg0, %c0_i32, %c0_i32_0 : i32, i32, i32
  }
  func.func @transform_2(%arg0: i32, %arg1: i32) -> (i32, i32) {
    %c0_i32 = arith.constant 0 : i32
    %c0_i32_0 = arith.constant 0 : i32
    %c0_i32_1 = arith.constant 0 : i32
    return %c0_i32, %c0_i32_0 : i32, i32
  }
  func.func @transform_3(%arg0: i32, %arg1: i32) -> (i32, i32, i32) {
    %c0_i32 = arith.constant 0 : i32
    %c0_i32_0 = arith.constant 0 : i32
    return %arg0, %c0_i32, %arg1 : i32, i32, i32
  }
}

module attributes {stable_mosaic.version = 11 : i64} {
  func.func @_cmatmul_kernel(%arg0: i32, %arg1: i32, %arg2: memref<1x144x128xf32, #tpu.memory_space<vmem>>, %arg3: memref<1x32x144xf32, #tpu.memory_space<vmem>>, %arg4: memref<32x1xf32, #tpu.memory_space<vmem>>, %arg5: memref<1x32x128xf32, #tpu.memory_space<vmem>>) attributes {dimension_semantics = [#tpu.dimension_semantics<parallel>, #tpu.dimension_semantics<parallel>], iteration_bounds = array<i64: 1, 1>, scalar_prefetch = 0 : i64, scratch_operands = 0 : i64, tpu.core_type = #tpu.core_type<tc>, window_params = [{transform_indices = @transform_0, window_bounds = array<i64: 1, 144, 128>}, {transform_indices = @transform_1, window_bounds = array<i64: 1, 32, 144>}, {pipeline_mode = #tpu.pipeline_mode<synchronous>, transform_indices = @transform_2, window_bounds = array<i64: 32, 1>}, {transform_indices = @transform_3, window_bounds = array<i64: 1, 32, 128>}]} {
    %c0 = arith.constant 0 : index
    %c0_0 = arith.constant 0 : index
    %c0_1 = arith.constant 0 : index
    %0 = vector.load %arg3[%c0, %c0_0, %c0_1] : memref<1x32x144xf32, #tpu.memory_space<vmem>>, vector<1x32x144xf32>
    %1 = vector.shape_cast %0 : vector<1x32x144xf32> to vector<32x144xf32>
    %c0_2 = arith.constant 0 : index
    %c0_3 = arith.constant 0 : index
    %c0_4 = arith.constant 0 : index
    %2 = vector.load %arg2[%c0_2, %c0_3, %c0_4] : memref<1x144x128xf32, #tpu.memory_space<vmem>>, vector<1x144x128xf32>
    %3 = vector.shape_cast %2 : vector<1x144x128xf32> to vector<144x128xf32>
    %cst = arith.constant dense<0.000000e+00> : vector<32x128xf32>
    %4 = tpu.matmul %1, %3, %cst {dimension_numbers = #tpu.dot_dimension_numbers<[1], [0], [0], [1], [0, 0, 1, 1], [], []>} : vector<32x144xf32>, vector<144x128xf32>, vector<32x128xf32> -> vector<32x128xf32>
    %c0_5 = arith.constant 0 : index
    %c0_6 = arith.constant 0 : index
    %5 = vector.load %arg4[%c0_5, %c0_6] : memref<32x1xf32, #tpu.memory_space<vmem>>, vector<32x1xf32>
    %6 = vector.broadcast %5 : vector<32x1xf32> to vector<32x128xf32>
    %7 = arith.addf %4, %6 : vector<32x128xf32>
    %cst_7 = arith.constant 0.000000e+00 : f32
    %8 = vector.broadcast %cst_7 : f32 to vector<32x128xf32>
    %9 = arith.maximumf %7, %8 : vector<32x128xf32>
    %c0_8 = arith.constant 0 : index
    %c0_9 = arith.constant 0 : index
    %c0_10 = arith.constant 0 : index
    %10 = vector.load %arg5[%c0_8, %c0_9, %c0_10] : memref<1x32x128xf32, #tpu.memory_space<vmem>>, vector<1x32x128xf32>
    %11 = vector.shape_cast %10 : vector<1x32x128xf32> to vector<32x128xf32>
    %12 = vector.shape_cast %9 : vector<32x128xf32> to vector<1x32x128xf32>
    tpu.vector_store %arg5[%c0_8, %c0_9, %c0_10], %12 {strides = array<i32>} : memref<1x32x128xf32, #tpu.memory_space<vmem>>, vector<1x32x128xf32>,
    return
  }
  func.func @transform_0(%arg0: i32, %arg1: i32) -> (i32, i32, i32) {
    %c0_i32 = arith.constant 0 : i32
    %c0_i32_0 = arith.constant 0 : i32
    return %arg0, %c0_i32, %arg1 : i32, i32, i32
  }
  func.func @transform_1(%arg0: i32, %arg1: i32) -> (i32, i32, i32) {
    %c0_i32 = arith.constant 0 : i32
    %c0_i32_0 = arith.constant 0 : i32
    %c0_i32_1 = arith.constant 0 : i32
    return %arg0, %c0_i32, %c0_i32_0 : i32, i32, i32
  }
  func.func @transform_2(%arg0: i32, %arg1: i32) -> (i32, i32) {
    %c0_i32 = arith.constant 0 : i32
    %c0_i32_0 = arith.constant 0 : i32
    %c0_i32_1 = arith.constant 0 : i32
    return %c0_i32, %c0_i32_0 : i32, i32
  }
  func.func @transform_3(%arg0: i32, %arg1: i32) -> (i32, i32, i32) {
    %c0_i32 = arith.constant 0 : i32
    %c0_i32_0 = arith.constant 0 : i32
    return %arg0, %c0_i32, %arg1 : i32, i32, i32
  }
}

module attributes {stable_mosaic.version = 11 : i64} {
  func.func @_cmatmul_skip_kernel(%arg0: i32, %arg1: i32, %arg2: memref<1x128x128xf32, #tpu.memory_space<vmem>>, %arg3: memref<1x16x128xf32, #tpu.memory_space<vmem>>, %arg4: memref<16x1xf32, #tpu.memory_space<vmem>>, %arg5: memref<1x16x128xf32, #tpu.memory_space<vmem>>, %arg6: memref<1x16x128xf32, #tpu.memory_space<vmem>>) attributes {dimension_semantics = [#tpu.dimension_semantics<parallel>, #tpu.dimension_semantics<parallel>], iteration_bounds = array<i64: 4, 1>, scalar_prefetch = 0 : i64, scratch_operands = 0 : i64, tpu.core_type = #tpu.core_type<tc>, window_params = [{transform_indices = @transform_0, window_bounds = array<i64: 1, 128, 128>}, {transform_indices = @transform_1, window_bounds = array<i64: 1, 16, 128>}, {pipeline_mode = #tpu.pipeline_mode<synchronous>, transform_indices = @transform_2, window_bounds = array<i64: 16, 1>}, {transform_indices = @transform_3, window_bounds = array<i64: 1, 16, 128>}, {transform_indices = @transform_4, window_bounds = array<i64: 1, 16, 128>}]} {
    %c0 = arith.constant 0 : index
    %c0_0 = arith.constant 0 : index
    %c0_1 = arith.constant 0 : index
    %0 = vector.load %arg3[%c0, %c0_0, %c0_1] : memref<1x16x128xf32, #tpu.memory_space<vmem>>, vector<1x16x128xf32>
    %1 = vector.shape_cast %0 : vector<1x16x128xf32> to vector<16x128xf32>
    %c0_2 = arith.constant 0 : index
    %c0_3 = arith.constant 0 : index
    %c0_4 = arith.constant 0 : index
    %2 = vector.load %arg2[%c0_2, %c0_3, %c0_4] : memref<1x128x128xf32, #tpu.memory_space<vmem>>, vector<1x128x128xf32>
    %3 = vector.shape_cast %2 : vector<1x128x128xf32> to vector<128x128xf32>
    %cst = arith.constant dense<0.000000e+00> : vector<16x128xf32>
    %4 = tpu.matmul %1, %3, %cst {dimension_numbers = #tpu.dot_dimension_numbers<[1], [0], [0], [1], [0, 0, 1, 1], [], []>} : vector<16x128xf32>, vector<128x128xf32>, vector<16x128xf32> -> vector<16x128xf32>
    %c0_5 = arith.constant 0 : index
    %c0_6 = arith.constant 0 : index
    %5 = vector.load %arg4[%c0_5, %c0_6] : memref<16x1xf32, #tpu.memory_space<vmem>>, vector<16x1xf32>
    %6 = vector.broadcast %5 : vector<16x1xf32> to vector<16x128xf32>
    %7 = arith.addf %4, %6 : vector<16x128xf32>
    %cst_7 = arith.constant 0.000000e+00 : f32
    %8 = vector.broadcast %cst_7 : f32 to vector<16x128xf32>
    %9 = arith.maximumf %7, %8 : vector<16x128xf32>
    %c0_8 = arith.constant 0 : index
    %c0_9 = arith.constant 0 : index
    %c0_10 = arith.constant 0 : index
    %10 = vector.load %arg5[%c0_8, %c0_9, %c0_10] : memref<1x16x128xf32, #tpu.memory_space<vmem>>, vector<1x16x128xf32>
    %11 = vector.shape_cast %10 : vector<1x16x128xf32> to vector<16x128xf32>
    %12 = arith.addf %9, %11 : vector<16x128xf32>
    %c0_11 = arith.constant 0 : index
    %c0_12 = arith.constant 0 : index
    %c0_13 = arith.constant 0 : index
    %13 = vector.load %arg6[%c0_11, %c0_12, %c0_13] : memref<1x16x128xf32, #tpu.memory_space<vmem>>, vector<1x16x128xf32>
    %14 = vector.shape_cast %13 : vector<1x16x128xf32> to vector<16x128xf32>
    %15 = vector.shape_cast %12 : vector<16x128xf32> to vector<1x16x128xf32>
    tpu.vector_store %arg6[%c0_11, %c0_12, %c0_13], %15 {strides = array<i32>} : memref<1x16x128xf32, #tpu.memory_space<vmem>>, vector<1x16x128xf32>,
    return
  }
  func.func @transform_0(%arg0: i32, %arg1: i32) -> (i32, i32, i32) {
    %c0_i32 = arith.constant 0 : i32
    %c0_i32_0 = arith.constant 0 : i32
    return %arg0, %c0_i32, %arg1 : i32, i32, i32
  }
  func.func @transform_1(%arg0: i32, %arg1: i32) -> (i32, i32, i32) {
    %c0_i32 = arith.constant 0 : i32
    %c0_i32_0 = arith.constant 0 : i32
    %c0_i32_1 = arith.constant 0 : i32
    return %arg0, %c0_i32, %c0_i32_0 : i32, i32, i32
  }
  func.func @transform_2(%arg0: i32, %arg1: i32) -> (i32, i32) {
    %c0_i32 = arith.constant 0 : i32
    %c0_i32_0 = arith.constant 0 : i32
    %c0_i32_1 = arith.constant 0 : i32
    return %c0_i32, %c0_i32_0 : i32, i32
  }
  func.func @transform_3(%arg0: i32, %arg1: i32) -> (i32, i32, i32) {
    %c0_i32 = arith.constant 0 : i32
    %c0_i32_0 = arith.constant 0 : i32
    return %arg0, %c0_i32, %arg1 : i32, i32, i32
  }
  func.func @transform_4(%arg0: i32, %arg1: i32) -> (i32, i32, i32) {
    %c0_i32 = arith.constant 0 : i32
    %c0_i32_0 = arith.constant 0 : i32
    return %arg0, %c0_i32, %arg1 : i32, i32, i32
  }
}

module attributes {stable_mosaic.version = 11 : i64} {
  func.func @_cmatmul_skip_kernel(%arg0: i32, %arg1: i32, %arg2: memref<1x64x128xf32, #tpu.memory_space<vmem>>, %arg3: memref<1x8x64xf32, #tpu.memory_space<vmem>>, %arg4: memref<8x1xf32, #tpu.memory_space<vmem>>, %arg5: memref<1x8x128xf32, #tpu.memory_space<vmem>>, %arg6: memref<1x8x128xf32, #tpu.memory_space<vmem>>) attributes {dimension_semantics = [#tpu.dimension_semantics<parallel>, #tpu.dimension_semantics<parallel>], iteration_bounds = array<i64: 4, 1>, scalar_prefetch = 0 : i64, scratch_operands = 0 : i64, tpu.core_type = #tpu.core_type<tc>, window_params = [{transform_indices = @transform_0, window_bounds = array<i64: 1, 64, 128>}, {transform_indices = @transform_1, window_bounds = array<i64: 1, 8, 64>}, {pipeline_mode = #tpu.pipeline_mode<synchronous>, transform_indices = @transform_2, window_bounds = array<i64: 8, 1>}, {transform_indices = @transform_3, window_bounds = array<i64: 1, 8, 128>}, {transform_indices = @transform_4, window_bounds = array<i64: 1, 8, 128>}]} {
    %c0 = arith.constant 0 : index
    %c0_0 = arith.constant 0 : index
    %c0_1 = arith.constant 0 : index
    %0 = vector.load %arg3[%c0, %c0_0, %c0_1] : memref<1x8x64xf32, #tpu.memory_space<vmem>>, vector<1x8x64xf32>
    %1 = vector.shape_cast %0 : vector<1x8x64xf32> to vector<8x64xf32>
    %c0_2 = arith.constant 0 : index
    %c0_3 = arith.constant 0 : index
    %c0_4 = arith.constant 0 : index
    %2 = vector.load %arg2[%c0_2, %c0_3, %c0_4] : memref<1x64x128xf32, #tpu.memory_space<vmem>>, vector<1x64x128xf32>
    %3 = vector.shape_cast %2 : vector<1x64x128xf32> to vector<64x128xf32>
    %cst = arith.constant dense<0.000000e+00> : vector<8x128xf32>
    %4 = tpu.matmul %1, %3, %cst {dimension_numbers = #tpu.dot_dimension_numbers<[1], [0], [0], [1], [0, 0, 1, 1], [], []>} : vector<8x64xf32>, vector<64x128xf32>, vector<8x128xf32> -> vector<8x128xf32>
    %c0_5 = arith.constant 0 : index
    %c0_6 = arith.constant 0 : index
    %5 = vector.load %arg4[%c0_5, %c0_6] : memref<8x1xf32, #tpu.memory_space<vmem>>, vector<8x1xf32>
    %6 = vector.broadcast %5 : vector<8x1xf32> to vector<8x128xf32>
    %7 = arith.addf %4, %6 : vector<8x128xf32>
    %cst_7 = arith.constant 0.000000e+00 : f32
    %8 = vector.broadcast %cst_7 : f32 to vector<8x128xf32>
    %9 = arith.maximumf %7, %8 : vector<8x128xf32>
    %c0_8 = arith.constant 0 : index
    %c0_9 = arith.constant 0 : index
    %c0_10 = arith.constant 0 : index
    %10 = vector.load %arg5[%c0_8, %c0_9, %c0_10] : memref<1x8x128xf32, #tpu.memory_space<vmem>>, vector<1x8x128xf32>
    %11 = vector.shape_cast %10 : vector<1x8x128xf32> to vector<8x128xf32>
    %12 = arith.addf %9, %11 : vector<8x128xf32>
    %c0_11 = arith.constant 0 : index
    %c0_12 = arith.constant 0 : index
    %c0_13 = arith.constant 0 : index
    %13 = vector.load %arg6[%c0_11, %c0_12, %c0_13] : memref<1x8x128xf32, #tpu.memory_space<vmem>>, vector<1x8x128xf32>
    %14 = vector.shape_cast %13 : vector<1x8x128xf32> to vector<8x128xf32>
    %15 = vector.shape_cast %12 : vector<8x128xf32> to vector<1x8x128xf32>
    tpu.vector_store %arg6[%c0_11, %c0_12, %c0_13], %15 {strides = array<i32>} : memref<1x8x128xf32, #tpu.memory_space<vmem>>, vector<1x8x128xf32>,
    return
  }
  func.func @transform_0(%arg0: i32, %arg1: i32) -> (i32, i32, i32) {
    %c0_i32 = arith.constant 0 : i32
    %c0_i32_0 = arith.constant 0 : i32
    return %arg0, %c0_i32, %arg1 : i32, i32, i32
  }
  func.func @transform_1(%arg0: i32, %arg1: i32) -> (i32, i32, i32) {
    %c0_i32 = arith.constant 0 : i32
    %c0_i32_0 = arith.constant 0 : i32
    %c0_i32_1 = arith.constant 0 : i32
    return %arg0, %c0_i32, %c0_i32_0 : i32, i32, i32
  }
  func.func @transform_2(%arg0: i32, %arg1: i32) -> (i32, i32) {
    %c0_i32 = arith.constant 0 : i32
    %c0_i32_0 = arith.constant 0 : i32
    %c0_i32_1 = arith.constant 0 : i32
    return %c0_i32, %c0_i32_0 : i32, i32
  }
  func.func @transform_3(%arg0: i32, %arg1: i32) -> (i32, i32, i32) {
    %c0_i32 = arith.constant 0 : i32
    %c0_i32_0 = arith.constant 0 : i32
    return %arg0, %c0_i32, %arg1 : i32, i32, i32
  }
  func.func @transform_4(%arg0: i32, %arg1: i32) -> (i32, i32, i32) {
    %c0_i32 = arith.constant 0 : i32
    %c0_i32_0 = arith.constant 0 : i32
    return %arg0, %c0_i32, %arg1 : i32, i32, i32
  }
}

module attributes {stable_mosaic.version = 11 : i64} {
  func.func @_cmatmul_kernel(%arg0: i32, %arg1: i32, %arg2: memref<1x32x256xf32, #tpu.memory_space<vmem>>, %arg3: memref<1x2x32xf32, #tpu.memory_space<vmem>>, %arg4: memref<2x1xf32, #tpu.memory_space<vmem>>, %arg5: memref<1x2x256xf32, #tpu.memory_space<vmem>>) attributes {dimension_semantics = [#tpu.dimension_semantics<parallel>, #tpu.dimension_semantics<parallel>], iteration_bounds = array<i64: 4, 1>, scalar_prefetch = 0 : i64, scratch_operands = 0 : i64, tpu.core_type = #tpu.core_type<tc>, window_params = [{transform_indices = @transform_0, window_bounds = array<i64: 1, 32, 256>}, {transform_indices = @transform_1, window_bounds = array<i64: 1, 2, 32>}, {pipeline_mode = #tpu.pipeline_mode<synchronous>, transform_indices = @transform_2, window_bounds = array<i64: 2, 1>}, {transform_indices = @transform_3, window_bounds = array<i64: 1, 2, 256>}]} {
    %c0 = arith.constant 0 : index
    %c0_0 = arith.constant 0 : index
    %c0_1 = arith.constant 0 : index
    %0 = vector.load %arg3[%c0, %c0_0, %c0_1] : memref<1x2x32xf32, #tpu.memory_space<vmem>>, vector<1x2x32xf32>
    %1 = vector.shape_cast %0 : vector<1x2x32xf32> to vector<2x32xf32>
    %c0_2 = arith.constant 0 : index
    %c0_3 = arith.constant 0 : index
    %c0_4 = arith.constant 0 : index
    %2 = vector.load %arg2[%c0_2, %c0_3, %c0_4] : memref<1x32x256xf32, #tpu.memory_space<vmem>>, vector<1x32x256xf32>
    %3 = vector.shape_cast %2 : vector<1x32x256xf32> to vector<32x256xf32>
    %cst = arith.constant dense<0.000000e+00> : vector<2x256xf32>
    %4 = tpu.matmul %1, %3, %cst {dimension_numbers = #tpu.dot_dimension_numbers<[1], [0], [0], [1], [0, 0, 1, 1], [], []>} : vector<2x32xf32>, vector<32x256xf32>, vector<2x256xf32> -> vector<2x256xf32>
    %c0_5 = arith.constant 0 : index
    %c0_6 = arith.constant 0 : index
    %5 = vector.load %arg4[%c0_5, %c0_6] : memref<2x1xf32, #tpu.memory_space<vmem>>, vector<2x1xf32>
    %6 = vector.broadcast %5 : vector<2x1xf32> to vector<2x256xf32>
    %7 = arith.addf %4, %6 : vector<2x256xf32>
    %c0_7 = arith.constant 0 : index
    %c0_8 = arith.constant 0 : index
    %c0_9 = arith.constant 0 : index
    %8 = vector.load %arg5[%c0_7, %c0_8, %c0_9] : memref<1x2x256xf32, #tpu.memory_space<vmem>>, vector<1x2x256xf32>
    %9 = vector.shape_cast %8 : vector<1x2x256xf32> to vector<2x256xf32>
    %10 = vector.shape_cast %7 : vector<2x256xf32> to vector<1x2x256xf32>
    tpu.vector_store %arg5[%c0_7, %c0_8, %c0_9], %10 {strides = array<i32>} : memref<1x2x256xf32, #tpu.memory_space<vmem>>, vector<1x2x256xf32>,
    return
  }
  func.func @transform_0(%arg0: i32, %arg1: i32) -> (i32, i32, i32) {
    %c0_i32 = arith.constant 0 : i32
    %c0_i32_0 = arith.constant 0 : i32
    return %arg0, %c0_i32, %arg1 : i32, i32, i32
  }
  func.func @transform_1(%arg0: i32, %arg1: i32) -> (i32, i32, i32) {
    %c0_i32 = arith.constant 0 : i32
    %c0_i32_0 = arith.constant 0 : i32
    %c0_i32_1 = arith.constant 0 : i32
    return %arg0, %c0_i32, %c0_i32_0 : i32, i32, i32
  }
  func.func @transform_2(%arg0: i32, %arg1: i32) -> (i32, i32) {
    %c0_i32 = arith.constant 0 : i32
    %c0_i32_0 = arith.constant 0 : i32
    %c0_i32_1 = arith.constant 0 : i32
    return %c0_i32, %c0_i32_0 : i32, i32
  }
  func.func @transform_3(%arg0: i32, %arg1: i32) -> (i32, i32, i32) {
    %c0_i32 = arith.constant 0 : i32
    %c0_i32_0 = arith.constant 0 : i32
    return %arg0, %c0_i32, %arg1 : i32, i32, i32
  }
}

</mosaic_0001>

<bundles_post_ra>
// kernel: neg.29
= control target key start
LH: loop header
LB: loop body
LE: loop exit
PB: predicated region body
PF: predicated region fallthrough
CT: control target
= control target key end

     0   :  { %s24_s0 = inlined_call_operand.vmem [shape: f32[1,16], index: 0, kind: input, shape index: {}]   ;;  %s25_s1 = inlined_call_operand.vmem [shape: f32[1,16], index: 1, kind: output, shape index: {}]  }
   0x1   :  { %v2_v0 = vld [vmem:[%s24_s0] sm:$0x1] }
   0x2   :  { %v5_v1 = vxor.u32 2147483648, %v2_v0 }
   0x4   :  { %7 = vst [vmem:[%s25_s1] sm:$0x1] %v5_v1 }

// kernel: neg.25
= control target key start
LH: loop header
LB: loop body
LE: loop exit
PB: predicated region body
PF: predicated region fallthrough
CT: control target
= control target key end

     0   :  { %s24_s0 = inlined_call_operand.vmem [shape: f32[4,32], index: 0, kind: input, shape index: {}]   ;;  %s25_s1 = inlined_call_operand.vmem [shape: f32[4,32], index: 1, kind: output, shape index: {}]  }
   0x1   :  { %v2_v0 = vld [vmem:[%s24_s0] sm:$0xf] }
   0x2   :  { %v5_v1 = vxor.u32 2147483648, %v2_v0 }
   0x4   :  { %7 = vst [vmem:[%s25_s1] sm:$0xf] %v5_v1 }

// kernel: neg.17
= control target key start
LH: loop header
LB: loop body
LE: loop exit
PB: predicated region body
PF: predicated region fallthrough
CT: control target
= control target key end

     0   :  { %s40_s0 = inlined_call_operand.vmem [shape: f32[16,72], index: 0, kind: input, shape index: {}]   ;;  %s41_s1 = inlined_call_operand.vmem [shape: f32[16,72], index: 1, kind: output, shape index: {}]  }
   0x1   :  { %v2_v0 = vld [vmem:[%s40_s0] sm:$0xff]  ;;  %v16_v1 = vld [vmem:[%s40_s0 + $0x8] sm:$0xff] }
   0x2   :  { %v5_v2 = vxor.u32 2147483648, %v2_v0  ;;  %v12_v3 = vxor.u32 2147483648, %v16_v1 }
   0x4   :  { %7 = vst [vmem:[%s41_s1] sm:$0xff] %v5_v2 }
   0x5   :  { %17 = vst [vmem:[%s41_s1 + $0x8] sm:$0xff] %v12_v3 }

// kernel: neg.19
= control target key start
LH: loop header
LB: loop body
LE: loop exit
PB: predicated region body
PF: predicated region fallthrough
CT: control target
= control target key end

     0   :  { %s24_s0 = inlined_call_operand.vmem [shape: f32[8,64], index: 0, kind: input, shape index: {}]   ;;  %s25_s1 = inlined_call_operand.vmem [shape: f32[8,64], index: 1, kind: output, shape index: {}]  }
   0x1   :  { %v2_v0 = vld [vmem:[%s24_s0] sm:$0xff] }
   0x2   :  { %v5_v1 = vxor.u32 2147483648, %v2_v0 }
   0x4   :  { %7 = vst [vmem:[%s25_s1] sm:$0xff] %v5_v1 }

// kernel: squeeze.8
= control target key start
LH: loop header
LB: loop body
LE: loop exit
PB: predicated region body
PF: predicated region fallthrough
CT: control target
= control target key end

     0   :  { %s185_s8 = smov 96   ;;  %s186_s9 = smov 112   ;;  %vm3_vm0 = vcmask 130048   ;;  %s358_s0 = inlined_call_operand.vmem [shape: f32[1,8,256], index: 0, kind: input, shape index: {}]   ;;  %s359_s1 = inlined_call_operand.vmem [shape: f32[8,1,16,16], index: 1, kind: output, shape index: {}]  }
   0x1   :  { %v36_v0 = vld.sshfl [vmem:[%s358_s0] sm:$0xff pattern:$0xb3a29180]   ;;  %s187_s10 = smov 80   ;;  %s188_s13 = smov 64  }
   0x2   :  { %37 = vrot.lane.b32.xlu1 %v36_v0, %s185_s8  ;;  %20 = vrot.lane.b32.xlu0 %v36_v0, %s186_s9  ;;  %v150_v1 = vld.sshfl [vmem:[%s358_s0 + $0x4] sm:$0xff pattern:$0xb3a29180]   ;;  %s189_s14 = smov 48   ;;  %s190_s15 = smov 32  }
   0x3   :  { %54 = vrot.lane.b32.xlu2 %v36_v0, %s187_s10  ;;  %s191_s16 = smov 16   ;;  %v2_v8 = vld [vmem:[%s358_s0] sm:$0xff]   ;;  %v138_v11 = vld [vmem:[%s358_s0 + $0x8] sm:$0xff]  }
   0x4   :  { %4 = vst.msk [vmem:[%s359_s1] ss:$16 sm:$0x3] %vm3_vm0, %v2_v8  }
   0x5   :  { %5 = vst.msk [vmem:[%s359_s1] ss:$16 sm:$0xc] %vm3_vm0, %v2_v8  }
   0x6   :  { %6 = vst.msk [vmem:[%s359_s1] ss:$16 sm:$0x30] %vm3_vm0, %v2_v8  }
   0x7   :  { %7 = vst.msk [vmem:[%s359_s1] ss:$16 sm:$0xc0] %vm3_vm0, %v2_v8  }
   0x8   :  { %139 = vst.msk [vmem:[%s359_s1 + $0x8] ss:$16 sm:$0x3] %vm3_vm0, %v138_v11  }
   0x9   :  { %140 = vst.msk [vmem:[%s359_s1 + $0x8] ss:$16 sm:$0xc] %vm3_vm0, %v138_v11  }
   0xa   :  { %46 = vrot.lane.b32.xlu1 %v150_v1, %s185_s8  ;;  %29 = vrot.lane.b32.xlu0 %v150_v1, %s186_s9  ;;  %141 = vst.msk [vmem:[%s359_s1 + $0x8] ss:$16 sm:$0x30] %vm3_vm0, %v138_v11  }
   0xb   :  { %63 = vrot.lane.b32.xlu2 %v150_v1, %s187_s10  ;;  %142 = vst.msk [vmem:[%s359_s1 + $0x8] ss:$16 sm:$0xc0] %vm3_vm0, %v138_v11  }
  0x12   :  { %80 = vrot.lane.b32.xlu1 %v150_v1, %s188_s13  ;;  %71 = vrot.lane.b32.xlu0 %v36_v0, %s188_s13 }
  0x13   :  { %88 = vrot.lane.b32.xlu2 %v36_v0, %s189_s14 }
  0x1a   :  { %105 = vrot.lane.b32.xlu1 %v36_v0, %s190_s15  ;;  %97 = vrot.lane.b32.xlu0 %v150_v1, %s189_s14 }
  0x1b   :  { %114 = vrot.lane.b32.xlu2 %v150_v1, %s190_s15 }
  0x22   :  { %131 = vrot.lane.b32.xlu1 %v150_v1, %s191_s16  ;;  %122 = vrot.lane.b32.xlu0 %v36_v0, %s191_s16 }
  0x5d   :  { %v55_v2 = vpop.permute.xlu2 %54  }
  0x5e   :  { %153 = vst.msk [vmem:[%s359_s1 + $0x3] ss:$8 sm:$0xf] %vm3_vm0, %v55_v2  }
  0x5f   :  { %154 = vst.msk [vmem:[%s359_s1 + $0x3] ss:$8 sm:$0xf0] %vm3_vm0, %v55_v2  }
  0x65   :  { %v64_v3 = vpop.permute.xlu2 %63  }
  0x66   :  { %156 = vst.msk [vmem:[%s359_s1 + $0x43] ss:$8 sm:$0xf] %vm3_vm0, %v64_v3  }
  0x67   :  { %157 = vst.msk [vmem:[%s359_s1 + $0x43] ss:$8 sm:$0xf0] %vm3_vm0, %v64_v3  }
  0x6d   :  { %v89_v4 = vpop.permute.xlu2 %88  }
  0x6e   :  { %163 = vst.msk [vmem:[%s359_s1 + $0x5] ss:$8 sm:$0xf] %vm3_vm0, %v89_v4  }
  0x6f   :  { %164 = vst.msk [vmem:[%s359_s1 + $0x5] ss:$8 sm:$0xf0] %vm3_vm0, %v89_v4  }
  0x74   :  { %v38_v5 = vpop.permute.xlu1 %37   ;;  %v21_v6 = vpop.permute.xlu0 %20  }
  0x75   :  { %148 = vst.msk [vmem:[%s359_s1 + $0x2] ss:$8 sm:$0xf] %vm3_vm0, %v38_v5   ;;  %v115_v7 = vpop.permute.xlu2 %114  }
  0x76   :  { %149 = vst.msk [vmem:[%s359_s1 + $0x2] ss:$8 sm:$0xf0] %vm3_vm0, %v38_v5  }
  0x77   :  { %143 = vst.msk [vmem:[%s359_s1 + $0x1] ss:$8 sm:$0xf] %vm3_vm0, %v21_v6  }
  0x78   :  { %144 = vst.msk [vmem:[%s359_s1 + $0x1] ss:$8 sm:$0xf0] %vm3_vm0, %v21_v6  }
  0x79   :  { %171 = vst.msk [vmem:[%s359_s1 + $0x46] ss:$8 sm:$0xf] %vm3_vm0, %v115_v7  }
  0x7a   :  { %172 = vst.msk [vmem:[%s359_s1 + $0x46] ss:$8 sm:$0xf0] %vm3_vm0, %v115_v7  }
  0x7c   :  { %v47_v9 = vpop.permute.xlu1 %46   ;;  %v30_v10 = vpop.permute.xlu0 %29  }
  0x7d   :  { %151 = vst.msk [vmem:[%s359_s1 + $0x42] ss:$8 sm:$0xf] %vm3_vm0, %v47_v9  }
  0x7e   :  { %152 = vst.msk [vmem:[%s359_s1 + $0x42] ss:$8 sm:$0xf0] %vm3_vm0, %v47_v9  }
  0x7f   :  { %146 = vst.msk [vmem:[%s359_s1 + $0x41] ss:$8 sm:$0xf] %vm3_vm0, %v30_v10  }
  0x80   :  { %147 = vst.msk [vmem:[%s359_s1 + $0x41] ss:$8 sm:$0xf0] %vm3_vm0, %v30_v10  }
  0x84   :  { %v81_v12 = vpop.permute.xlu1 %80   ;;  %v72_v13 = vpop.permute.xlu0 %71  }
  0x85   :  { %161 = vst.msk [vmem:[%s359_s1 + $0x44] ss:$8 sm:$0xf] %vm3_vm0, %v81_v12  }
  0x86   :  { %162 = vst.msk [vmem:[%s359_s1 + $0x44] ss:$8 sm:$0xf0] %vm3_vm0, %v81_v12  }
  0x87   :  { %158 = vst.msk [vmem:[%s359_s1 + $0x4] ss:$8 sm:$0xf] %vm3_vm0, %v72_v13  }
  0x88   :  { %159 = vst.msk [vmem:[%s359_s1 + $0x4] ss:$8 sm:$0xf0] %vm3_vm0, %v72_v13  }
  0x8c   :  { %v106_v14 = vpop.permute.xlu1 %105   ;;  %v98_v15 = vpop.permute.xlu0 %97  }
  0x8d   :  { %168 = vst.msk [vmem:[%s359_s1 + $0x6] ss:$8 sm:$0xf] %vm3_vm0, %v106_v14  }
  0x8e   :  { %169 = vst.msk [vmem:[%s359_s1 + $0x6] ss:$8 sm:$0xf0] %vm3_vm0, %v106_v14  }
  0x8f   :  { %166 = vst.msk [vmem:[%s359_s1 + $0x45] ss:$8 sm:$0xf] %vm3_vm0, %v98_v15  }
  0x90   :  { %167 = vst.msk [vmem:[%s359_s1 + $0x45] ss:$8 sm:$0xf0] %vm3_vm0, %v98_v15  }
  0x94   :  { %v132_v16 = vpop.permute.xlu1 %131   ;;  %v123_v17 = vpop.permute.xlu0 %122  }
  0x95   :  { %176 = vst.msk [vmem:[%s359_s1 + $0x47] ss:$8 sm:$0xf] %vm3_vm0, %v132_v16  }
  0x96   :  { %177 = vst.msk [vmem:[%s359_s1 + $0x47] ss:$8 sm:$0xf0] %vm3_vm0, %v132_v16  }
  0x97   :  { %173 = vst.msk [vmem:[%s359_s1 + $0x7] ss:$8 sm:$0xf] %vm3_vm0, %v123_v17  }
  0x98   :  { %174 = vst.msk [vmem:[%s359_s1 + $0x7] ss:$8 sm:$0xf0] %vm3_vm0, %v123_v17  }

// kernel: net6_forward.6
= control target key start
LH: loop header
LB: loop body
LE: loop exit
PB: predicated region body
PF: predicated region fallthrough
CT: control target
= control target key end

     0   :  { %v85_v3 = vmov 0   ;;  %vm29_vm0 = vcmask 261120   ;;  %s142_s0 = inlined_call_operand.vmem [shape: f32[1,32,256], index: 0, kind: input, shape index: {}]   ;;  %s143_s2 = inlined_call_operand.vmem [shape: f32[8,1], index: 2, kind: input, shape index: {}]   ;;  %s144_s1 = inlined_call_operand.vmem [shape: f32[1,8,32], index: 1, kind: input, shape index: {}]   ;;  %s145_s3 = inlined_call_operand.vmem [shape: f32[1,8,256], index: 3, kind: output, shape index: {}]  }
   0x1   :  { %v21_v0 = vld [vmem:[%s142_s0 + $0x30] sm:$0xff]  ;;  %v22_v1 = vld [vmem:[%s142_s0 + $0x38] sm:$0xff]  ;;  %v19_v2 = vld [vmem:[%s142_s0 + $0x20] sm:$0xff]  ;;  %84 = vset.pattern.permute.xlu0 %v85_v3 }
   0x2   :  { %45 = vmatpush.msra.mxu0 %v21_v0  ;;  %65 = vmatpush.msra.mxu1 %v22_v1  ;;  %v20_v4 = vld [vmem:[%s142_s0 + $0x28] sm:$0xff]  ;;  %v17_v5 = vld [vmem:[%s142_s0 + $0x10] sm:$0xff]  ;;  %v18_v6 = vld [vmem:[%s142_s0 + $0x18] sm:$0xff] }
   0x3   :  { %v23_v7 = vld [vmem:[%s143_s2] sm:$0xff]  ;;  %v16_v9 = vld [vmem:[%s142_s0 + $0x8] sm:$0xff] }
   0x4   :  { %46 = vmatpush.msra.mxu0 %v19_v2  ;;  %66 = vmatpush.msra.mxu1 %v20_v4  ;;  %v15_v8 = vld [vmem:[%s142_s0] sm:$0xff] }
   0x5   :  { %26 = vperm.xlu0 %84, %v23_v7   ;;  %v14_v10 = vld [vmem:[%s144_s1] sm:$0xff] }
   0x6   :  { %47 = vmatpush.msra.mxu0 %v17_v5  ;;  %67 = vmatpush.msra.mxu1 %v18_v6 }
   0x8   :  { %48 = vmatpush.msra.mxu0 %v15_v8  ;;  %68 = vmatpush.msra.mxu1 %v16_v9 }
   0x9   :  { %81 = vmatmul.msk.f32.vlgmr.msra.gmra.mxu0 %vm29_vm0, %v14_v10  ;;  %82 = vmatmul.msk.f32.vlgmr.msra.gmra.mxu1 %vm29_vm0, %v14_v10 }
  0x77   :  { %v27_v11 = vpop.permute.xlu0 %26 }
  0x86   :  { %v50_v12 = vpop.f32.mrf.mxu0  ;;  %v70_v13 = vpop.f32.mrf.mxu1 }
  0x87   :  { %v51_v14 = vadd.f32 %v50_v12, %v27_v11  ;;  %v71_v15 = vadd.f32 %v70_v13, %v27_v11 }
  0x89   :  { %v73_v16 = vmax.f32 %v51_v14, 0.0  ;;  %v74_v17 = vmax.f32 %v71_v15, 0.0 }
  0x8b   :  { %75 = vst [vmem:[%s145_s3] sm:$0xff] %v73_v16 }
  0x8c   :  { %76 = vst [vmem:[%s145_s3 + $0x8] sm:$0xff] %v74_v17 }

// kernel: net6_forward.7
= control target key start
LH: loop header
LB: loop body
LE: loop exit
PB: predicated region body
PF: predicated region fallthrough
CT: control target
= control target key end

     0   :  { %v90_v2 = vmov 0   ;;  %vm38_vm0 = vcmask 654336   ;;  %s159_s0 = inlined_call_operand.vmem [shape: f32[1,80,128], index: 0, kind: input, shape index: {}]   ;;  %s160_s2 = inlined_call_operand.vmem [shape: f32[16,1], index: 2, kind: input, shape index: {}]   ;;  %s161_s1 = inlined_call_operand.vmem [shape: f32[1,16,80], index: 1, kind: input, shape index: {}]   ;;  %s162_s3 = inlined_call_operand.vmem [shape: f32[1,16,128], index: 3, kind: output, shape index: {}]  }
   0x1   :  { %v25_v0 = vld [vmem:[%s159_s0 + $0x48] sm:$0xff]  ;;  %v24_v1 = vld [vmem:[%s159_s0 + $0x40] sm:$0xff]  ;;  %89 = vset.pattern.permute.xlu0 %v90_v2  ;;  %v23_v3 = vld [vmem:[%s159_s0 + $0x38] sm:$0xff] }
   0x2   :  { %51 = vmatpush.msra.mxu0 %v25_v0  ;;  %78 = vmatpush.msra.mxu1 %v25_v0  ;;  %v26_v4 = vld [vmem:[%s160_s2] sm:$0xff]  ;;  %v22_v5 = vld [vmem:[%s159_s0 + $0x30] sm:$0xff]  ;;  %v21_v6 = vld [vmem:[%s159_s0 + $0x28] sm:$0xff] }
   0x3   :  { %30 = vperm.xlu0 %89, %v26_v4   ;;  %v20_v7 = vld [vmem:[%s159_s0 + $0x20] sm:$0xff]  ;;  %v27_v8 = vld [vmem:[%s160_s2 + $0x8] sm:$0xff]  ;;  %v19_v9 = vld [vmem:[%s159_s0 + $0x18] sm:$0xff] }
   0x4   :  { %52 = vmatpush.msra.mxu0 %v24_v1  ;;  %79 = vmatpush.msra.mxu1 %v24_v1  ;;  %v18_v10 = vld [vmem:[%s159_s0 + $0x10] sm:$0xff]  ;;  %v17_v11 = vld [vmem:[%s159_s0 + $0x8] sm:$0xff]  ;;  %v16_v12 = vld [vmem:[%s159_s0] sm:$0xff] }
   0x5   :  { %v14_v13 = vld [vmem:[%s161_s1] sm:$0xff]  ;;  %v15_v14 = vld [vmem:[%s161_s1 + $0x8] sm:$0xff] }
   0x6   :  { %53 = vmatpush.msra.mxu0 %v23_v3  ;;  %80 = vmatpush.msra.mxu1 %v23_v3 }
   0x8   :  { %54 = vmatpush.msra.mxu0 %v22_v5  ;;  %81 = vmatpush.msra.mxu1 %v22_v5 }
   0xa   :  { %55 = vmatpush.msra.mxu0 %v21_v6  ;;  %82 = vmatpush.msra.mxu1 %v21_v6 }
   0xb   :  { %35 = vperm.xlu0 %89, %v27_v8  }
   0xc   :  { %56 = vmatpush.msra.mxu0 %v20_v7  ;;  %83 = vmatpush.msra.mxu1 %v20_v7 }
   0xe   :  { %57 = vmatpush.msra.mxu0 %v19_v9  ;;  %84 = vmatpush.msra.mxu1 %v19_v9 }
  0x10   :  { %58 = vmatpush.msra.mxu0 %v18_v10  ;;  %85 = vmatpush.msra.mxu1 %v18_v10 }
  0x12   :  { %59 = vmatpush.msra.mxu0 %v17_v11  ;;  %86 = vmatpush.msra.mxu1 %v17_v11 }
  0x14   :  { %60 = vmatpush.msra.mxu0 %v16_v12  ;;  %87 = vmatpush.msra.mxu1 %v16_v12 }
  0x15   :  { %76 = vmatmul.msk.f32.vlgmr.msra.gmra.mxu0 %vm38_vm0, %v14_v13  ;;  %77 = vmatmul.msk.f32.vlgmr.msra.gmra.mxu1 %vm38_vm0, %v15_v14 }
  0x75   :  { %v31_v15 = vpop.permute.xlu0 %30 }
  0x7d   :  { %v36_v16 = vpop.permute.xlu0 %35 }
  0x92   :  { %v62_v17 = vpop.f32.mrf.mxu0  ;;  %v65_v18 = vpop.f32.mrf.mxu1 }
  0x93   :  { %v63_v19 = vadd.f32 %v62_v17, %v31_v15  ;;  %v66_v20 = vadd.f32 %v65_v18, %v36_v16 }
  0x95   :  { %v68_v21 = vmax.f32 %v63_v19, 0.0  ;;  %v69_v22 = vmax.f32 %v66_v20, 0.0 }
  0x97   :  { %70 = vst [vmem:[%s162_s3] sm:$0xff] %v68_v21 }
  0x98   :  { %71 = vst [vmem:[%s162_s3 + $0x8] sm:$0xff] %v69_v22 }

// kernel: net6_forward.8
= control target key start
LH: loop header
LB: loop body
LE: loop exit
PB: predicated region body
PF: predicated region fallthrough
CT: control target
= control target key end

     0   :  { %v186_v3 = vmov 0   ;;  %vm64_vm0 = vcmask 130048   ;;  %s313_s0 = inlined_call_operand.vmem [shape: f32[1,144,128], index: 0, kind: input, shape index: {}]   ;;  %s314_s1 = inlined_call_operand.vmem [shape: f32[1,32,144], index: 1, kind: input, shape index: {}]   ;;  %s315_s2 = inlined_call_operand.vmem [shape: f32[32,1], index: 2, kind: input, shape index: {}]   ;;  %s316_s3 = inlined_call_operand.vmem [shape: f32[1,32,128], index: 3, kind: output, shape index: {}]  }
   0x1   :  { %v37_v0 = vld [vmem:[%s313_s0 + $0x78] sm:$0xff]  ;;  %v36_v1 = vld [vmem:[%s313_s0 + $0x70] sm:$0xff]  ;;  %v35_v2 = vld [vmem:[%s313_s0 + $0x68] sm:$0xff]  ;;  %185 = vset.pattern.permute.xlu1 %v186_v3  ;;  %184 = vset.pattern.permute.xlu0 %v186_v3 }
   0x2   :  { %77 = vmatpush.msra.mxu0 %v37_v0  ;;  %151 = vmatpush.msra.mxu2 %v37_v0  ;;  %v39_v4 = vld [vmem:[%s313_s0 + $0x88] sm:$0xff]  ;;  %v34_v5 = vld [vmem:[%s313_s0 + $0x60] sm:$0xff]  ;;  %v33_v8 = vld [vmem:[%s313_s0 + $0x58] sm:$0xff] }
   0x3   :  { %152 = vmatpush.msra.mxu3 %v37_v0  ;;  %120 = vmatpush.msra.mxu1 %v39_v4  ;;  %v38_v6 = vld [vmem:[%s313_s0 + $0x80] sm:$0xff]  ;;  %v15_v7 = vld [vmem:[%s314_s1 + $0x8] sm:$0xff]  ;;  %v32_v9 = vld [vmem:[%s313_s0 + $0x50] sm:$0xff] }
   0x4   :  { %78 = vmatpush.msra.mxu0 %v36_v1  ;;  %153 = vmatpush.msra.mxu2 %v36_v1  ;;  %v42_v10 = vld [vmem:[%s315_s2 + $0x10] sm:$0xff]  ;;  %v31_v11 = vld [vmem:[%s313_s0 + $0x48] sm:$0xff]  ;;  %v40_v12 = vld [vmem:[%s315_s2] sm:$0xff] }
   0x5   :  { %154 = vmatpush.msra.mxu3 %v36_v1  ;;  %121 = vmatpush.msra.mxu1 %v38_v6  ;;  %v30_v13 = vld [vmem:[%s313_s0 + $0x40] sm:$0xff]  ;;  %v17_v14 = vld [vmem:[%s314_s1 + $0x18] sm:$0xff]  ;;  %v28_v16 = vld [vmem:[%s313_s0 + $0x30] sm:$0xff] }
   0x6   :  { %79 = vmatpush.msra.mxu0 %v35_v2  ;;  %155 = vmatpush.msra.mxu2 %v35_v2  ;;  %v29_v15 = vld [vmem:[%s313_s0 + $0x38] sm:$0xff]  ;;  %v27_v18 = vld [vmem:[%s313_s0 + $0x28] sm:$0xff]  ;;  %v26_v20 = vld [vmem:[%s313_s0 + $0x20] sm:$0xff] }
   0x7   :  { %156 = vmatpush.msra.mxu3 %v35_v2  ;;  %147 = vmatmul.msk.f32.vlgmr.msra.gmra.mxu1 %vm64_vm0, %v15_v7  ;;  %v43_v17 = vld [vmem:[%s315_s2 + $0x18] sm:$0xff]  ;;  %v41_v19 = vld [vmem:[%s315_s2 + $0x8] sm:$0xff]  ;;  %v24_v23 = vld [vmem:[%s313_s0 + $0x10] sm:$0xff] }
   0x8   :  { %80 = vmatpush.msra.mxu0 %v34_v5  ;;  %157 = vmatpush.msra.mxu2 %v34_v5  ;;  %v19_v21 = vld [vmem:[%s314_s1 + $0x28] sm:$0xff]  ;;  %v25_v22 = vld [vmem:[%s313_s0 + $0x18] sm:$0xff]  ;;  %v22_v25 = vld [vmem:[%s313_s0] sm:$0xff] }
   0x9   :  { %158 = vmatpush.msra.mxu3 %v34_v5  ;;  %56 = vperm.xlu1 %185, %v42_v10   ;;  %v23_v24 = vld [vmem:[%s313_s0 + $0x8] sm:$0xff]  ;;  %v14_v26 = vld [vmem:[%s314_s1] sm:$0xff]  ;;  %v16_v27 = vld [vmem:[%s314_s1 + $0x10] sm:$0xff] }
   0xa   :  { %81 = vmatpush.msra.mxu0 %v33_v8  ;;  %159 = vmatpush.msra.mxu2 %v33_v8  ;;  %v18_v28 = vld [vmem:[%s314_s1 + $0x20] sm:$0xff]  ;;  %v21_v29 = vld [vmem:[%s314_s1 + $0x38] sm:$0xff]  ;;  %v20_v30 = vld [vmem:[%s314_s1 + $0x30] sm:$0xff] }
   0xb   :  { %160 = vmatpush.msra.mxu3 %v33_v8  ;;  %46 = vperm.xlu0 %184, %v40_v12  }
   0xc   :  { %82 = vmatpush.msra.mxu0 %v32_v9  ;;  %161 = vmatpush.msra.mxu2 %v32_v9 }
   0xd   :  { %162 = vmatpush.msra.mxu3 %v32_v9 }
   0xe   :  { %83 = vmatpush.msra.mxu0 %v31_v11  ;;  %163 = vmatpush.msra.mxu2 %v31_v11 }
   0xf   :  { %164 = vmatpush.msra.mxu3 %v31_v11  ;;  %148 = vmatmul.msk.f32.gmra.mxu1 %vm64_vm0, %v17_v14 }
  0x10   :  { %84 = vmatpush.msra.mxu0 %v30_v13  ;;  %165 = vmatpush.msra.mxu2 %v30_v13 }
  0x11   :  { %166 = vmatpush.msra.mxu3 %v30_v13  ;;  %61 = vperm.xlu1 %185, %v43_v17  }
  0x12   :  { %85 = vmatpush.msra.mxu0 %v29_v15  ;;  %167 = vmatpush.msra.mxu2 %v29_v15 }
  0x13   :  { %168 = vmatpush.msra.mxu3 %v29_v15  ;;  %51 = vperm.xlu0 %184, %v41_v19  }
  0x14   :  { %86 = vmatpush.msra.mxu0 %v28_v16  ;;  %169 = vmatpush.msra.mxu2 %v28_v16 }
  0x15   :  { %170 = vmatpush.msra.mxu3 %v28_v16 }
  0x16   :  { %87 = vmatpush.msra.mxu0 %v27_v18  ;;  %171 = vmatpush.msra.mxu2 %v27_v18 }
  0x17   :  { %172 = vmatpush.msra.mxu3 %v27_v18  ;;  %149 = vmatmul.msk.f32.gmra.mxu1 %vm64_vm0, %v19_v21 }
  0x18   :  { %88 = vmatpush.msra.mxu0 %v26_v20  ;;  %173 = vmatpush.msra.mxu2 %v26_v20 }
  0x19   :  { %174 = vmatpush.msra.mxu3 %v26_v20 }
  0x1a   :  { %89 = vmatpush.msra.mxu0 %v25_v22  ;;  %175 = vmatpush.msra.mxu2 %v25_v22 }
  0x1b   :  { %176 = vmatpush.msra.mxu3 %v25_v22 }
  0x1c   :  { %90 = vmatpush.msra.mxu0 %v24_v23  ;;  %177 = vmatpush.msra.mxu2 %v24_v23 }
  0x1d   :  { %178 = vmatpush.msra.mxu3 %v24_v23 }
  0x1e   :  { %91 = vmatpush.msra.mxu0 %v23_v24  ;;  %179 = vmatpush.msra.mxu2 %v23_v24 }
  0x1f   :  { %180 = vmatpush.msra.mxu3 %v23_v24  ;;  %150 = vmatmul.msk.f32.gmra.mxu1 %vm64_vm0, %v21_v29 }
  0x20   :  { %92 = vmatpush.msra.mxu0 %v22_v25  ;;  %181 = vmatpush.msra.mxu2 %v22_v25 }
  0x21   :  { %182 = vmatpush.msra.mxu3 %v22_v25  ;;  %93 = vmatmul.f32.vlgmr.msra.gmra.mxu0 %v14_v26 }
  0x22   :  { %96 = vmatmul.f32.vlgmr.msra.gmra.mxu2 %v16_v27  ;;  %99 = vmatmul.f32.vlgmr.msra.gmra.mxu3 %v18_v28 }
  0x2a   :  { %102 = vmatmul.f32.gmra.mxu3 %v20_v30 }
  0x7b   :  { %v57_v37 = vpop.permute.xlu1 %56 }
  0x7d   :  { %v47_v32 = vpop.permute.xlu0 %46 }
  0x83   :  { %v62_v49 = vpop.permute.xlu1 %61 }
  0x84   :  { %v123_v31 = vpop.f32.mrf.mxu1 }
  0x85   :  { %v52_v39 = vpop.permute.xlu0 %51 }
  0x8c   :  { %v126_v33 = vpop.f32.mrf.mxu1 }
  0x94   :  { %v129_v40 = vpop.f32.mrf.mxu1 }
  0x9c   :  { %v132_v51 = vpop.f32.mrf.mxu1 }
  0x9e   :  { %v94_v34 = vpop.f32.mrf.mxu0 }
  0x9f   :  { %v95_v35 = vadd.f32 %v94_v34, %v47_v32 }
  0xa1   :  { %v124_v36 = vadd.f32 %v123_v31, %v95_v35 }
  0xa3   :  { %v135_v38 = vmax.f32 %v124_v36, 0.0 }
  0xa5   :  { %139 = vst [vmem:[%s316_s3] sm:$0xff] %v135_v38  ;;  %v97_v41 = vpop.f32.mrf.mxu2  ;;  %v100_v42 = vpop.f32.mrf.mxu3 }
  0xa6   :  { %v98_v43 = vadd.f32 %v97_v41, %v52_v39  ;;  %v101_v44 = vadd.f32 %v100_v42, %v57_v37 }
  0xa8   :  { %v127_v45 = vadd.f32 %v126_v33, %v98_v43  ;;  %v130_v46 = vadd.f32 %v129_v40, %v101_v44 }
  0xaa   :  { %v136_v47 = vmax.f32 %v127_v45, 0.0  ;;  %v137_v48 = vmax.f32 %v130_v46, 0.0 }
  0xac   :  { %140 = vst [vmem:[%s316_s3 + $0x8] sm:$0xff] %v136_v47 }
  0xad   :  { %141 = vst [vmem:[%s316_s3 + $0x10] sm:$0xff] %v137_v48  ;;  %v103_v50 = vpop.f32.mrf.mxu3 }
  0xae   :  { %v104_v52 = vadd.f32 %v103_v50, %v62_v49 }
  0xb0   :  { %v133_v53 = vadd.f32 %v132_v51, %v104_v52 }
  0xb2   :  { %v138_v54 = vmax.f32 %v133_v53, 0.0 }
  0xb4   :  { %142 = vst [vmem:[%s316_s3 + $0x18] sm:$0xff] %v138_v54 }

// kernel: net6_forward.9
= control target key start
LH: loop header
LB: loop body
LE: loop exit
PB: predicated region body
PF: predicated region fallthrough
CT: control target
= control target key end

     0   :  { %s565_s15 = smov 0   ;;  %s567_s16 = smov 0   ;;  %s632_s0 = inlined_call_operand.vmem [shape: f32[4,128,128], index: 0, kind: input, shape index: {}]   ;;  %s633_s1 = inlined_call_operand.vmem [shape: f32[4,16,128], index: 1, kind: input, shape index: {}]   ;;  %s634_s2 = inlined_call_operand.vmem [shape: f32[16,1], index: 2, kind: input, shape index: {}]   ;;  %s635_s3 = inlined_call_operand.vmem [shape: f32[4,16,128], index: 3, kind: input, shape index: {}]   ;;  %s636_s4 = inlined_call_operand.vmem [shape: f32[4,16,128], index: 4, kind: output, shape index: {}]  }
   0x1   :  { %s569_s17 = smov 0  }
   0x2 LB: > { %s26_s18 = sadd.s32 1, %s533_s16  ;;  %p458_p0 = scmp.ge.s32.totalorder %s537_s17, 1  ;;  %s537_s17 = sphi %s569_s17, %s14_s17   ;;  %s533_s16 = sphi %s567_s16, %s638_s16   ;;  %s529_s15 = sphi %s565_s15, %s637_s15  }
   0x3   : > { %p28_p1 = scmp.ge.s32.totalorder %s26_s18, 4  ;;  %p206_p2 = scmp.lt.s32.totalorder %s537_s17, 5 }
   0x5   : > { %s640_s18 = smov (%p28_p1, %s26_s18), 0  ;;  %p207_p3 = pnand %p458_p0, %p206_p2 }
   0x6   : > { %p251_p4 = scmp.lt.s32.totalorder (!%p207_p3), %s529_s15, 3 }
   0x7   : > { %210 = sbr.rel (%p207_p3) target bundleno = 181 (0xb5), region = 36 }
   0xc   : > { %v298_v0 = vld [vmem:[%s634_s2] sm:$0xff]  ;;  %v539_v1 = vmov 0   ;;  %s642_s15 = smov (!%p251_p4, %s529_s15), 3  ;;  %v299_v7 = vld [vmem:[%s634_s2 + $0x8] sm:$0xff] }
   0xd   : > { %514 = vset.pattern.permute.xlu0 %v539_v1  ;;  %s469_s21 = sshll.u32 %s642_s15, 7  ;;  %s470_s27 = sshll.u32 %s642_s15, 4 }
   0xe   : > { %302 = vperm.xlu0 %514, %v298_v0   ;;  %s592_s24 = scalar_lea.vmem %s632_s0, %s469_s21  ;;  %s263_s30 = scalar_lea.vmem %s633_s1, %s470_s27 }
   0xf   : > { %v297_v2 = vld [vmem:[%s592_s24 + $0x78] sm:$0xff]  ;;  %v296_v3 = vld [vmem:[%s592_s24 + $0x70] sm:$0xff]  ;;  %v295_v4 = vld [vmem:[%s592_s24 + $0x68] sm:$0xff]  ;;  %s271_s7 = scalar_lea.vmem %s635_s3, %s470_s27  ;;  %s279_s10 = scalar_lea.vmem %s636_s4, %s470_s27 }
  0x10   : > { %310 = vmatpush.msra.mxu0 %v297_v2  ;;  %473 = vmatpush.msra.mxu1 %v297_v2  ;;  %v294_v5 = vld [vmem:[%s592_s24 + $0x60] sm:$0xff]  ;;  %v293_v6 = vld [vmem:[%s592_s24 + $0x58] sm:$0xff]  ;;  %v292_v8 = vld [vmem:[%s592_s24 + $0x50] sm:$0xff] }
  0x11   : > { %v291_v9 = vld [vmem:[%s592_s24 + $0x48] sm:$0xff]  ;;  %v290_v10 = vld [vmem:[%s592_s24 + $0x40] sm:$0xff]  ;;  %v289_v11 = vld [vmem:[%s592_s24 + $0x38] sm:$0xff] }
  0x12   : > { %311 = vmatpush.msra.mxu0 %v296_v3  ;;  %474 = vmatpush.msra.mxu1 %v296_v3  ;;  %v288_v12 = vld [vmem:[%s592_s24 + $0x30] sm:$0xff]  ;;  %v287_v13 = vld [vmem:[%s592_s24 + $0x28] sm:$0xff]  ;;  %v286_v14 = vld [vmem:[%s592_s24 + $0x20] sm:$0xff] }
  0x13   : > { %v285_v15 = vld [vmem:[%s592_s24 + $0x18] sm:$0xff]  ;;  %v284_v16 = vld [vmem:[%s592_s24 + $0x10] sm:$0xff]  ;;  %v283_v17 = vld [vmem:[%s592_s24 + $0x8] sm:$0xff] }
  0x14   : > { %312 = vmatpush.msra.mxu0 %v295_v4  ;;  %475 = vmatpush.msra.mxu1 %v295_v4  ;;  %v282_v18 = vld [vmem:[%s592_s24] sm:$0xff]  ;;  %v281_v20 = vld [vmem:[%s263_s30 + $0x8] sm:$0xff] }
  0x15   : > { %v280_v19 = vld [vmem:[%s263_s30] sm:$0xff]  ;;  %v336_v28 = vld [vmem:[%s271_s7 + $0x8] sm:$0xff] }
  0x16   : > { %313 = vmatpush.msra.mxu0 %v294_v5  ;;  %476 = vmatpush.msra.mxu1 %v294_v5  ;;  %v335_v27 = vld [vmem:[%s271_s7] sm:$0xff] }
  0x17   : > { %307 = vperm.xlu0 %514, %v299_v7  }
  0x18   : > { %314 = vmatpush.msra.mxu0 %v293_v6  ;;  %477 = vmatpush.msra.mxu1 %v293_v6 }
  0x1a   : > { %315 = vmatpush.msra.mxu0 %v292_v8  ;;  %478 = vmatpush.msra.mxu1 %v292_v8 }
  0x1c   : > { %316 = vmatpush.msra.mxu0 %v291_v9  ;;  %479 = vmatpush.msra.mxu1 %v291_v9 }
  0x1e   : > { %317 = vmatpush.msra.mxu0 %v290_v10  ;;  %480 = vmatpush.msra.mxu1 %v290_v10 }
  0x20   : > { %318 = vmatpush.msra.mxu0 %v289_v11  ;;  %481 = vmatpush.msra.mxu1 %v289_v11 }
  0x22   : > { %319 = vmatpush.msra.mxu0 %v288_v12  ;;  %482 = vmatpush.msra.mxu1 %v288_v12 }
  0x24   : > { %320 = vmatpush.msra.mxu0 %v287_v13  ;;  %483 = vmatpush.msra.mxu1 %v287_v13 }
  0x26   : > { %321 = vmatpush.msra.mxu0 %v286_v14  ;;  %484 = vmatpush.msra.mxu1 %v286_v14 }
  0x28   : > { %322 = vmatpush.msra.mxu0 %v285_v15  ;;  %485 = vmatpush.msra.mxu1 %v285_v15 }
  0x2a   : > { %323 = vmatpush.msra.mxu0 %v284_v16  ;;  %486 = vmatpush.msra.mxu1 %v284_v16 }
  0x2c   : > { %324 = vmatpush.msra.mxu0 %v283_v17  ;;  %487 = vmatpush.msra.mxu1 %v283_v17 }
  0x2e   : > { %325 = vmatpush.msra.mxu0 %v282_v18  ;;  %488 = vmatpush.msra.mxu1 %v282_v18 }
  0x2f   : > { %326 = vmatmul.f32.vlgmr.msra.gmra.mxu0 %v280_v19  ;;  %329 = vmatmul.f32.vlgmr.msra.gmra.mxu1 %v281_v20 }
  0x80   : > { %v303_v21 = vpop.permute.xlu0 %302 }
  0x89   : > { %v308_v22 = vpop.permute.xlu0 %307 }
  0xac   : > { %v327_v23 = vpop.f32.mrf.mxu0  ;;  %v330_v24 = vpop.f32.mrf.mxu1 }
  0xad   : > { %v328_v25 = vadd.f32 %v327_v23, %v303_v21  ;;  %v331_v26 = vadd.f32 %v330_v24, %v308_v22 }
  0xaf   : > { %v333_v29 = vmax.f32 %v328_v25, 0.0  ;;  %v334_v30 = vmax.f32 %v331_v26, 0.0 }
  0xb1   : > { %v337_v31 = vadd.f32 %v335_v27, %v333_v29  ;;  %v338_v32 = vadd.f32 %v336_v28, %v334_v30 }
  0xb3   : > { %339 = vst [vmem:[%s279_s10] sm:$0xff] %v337_v31 }
  0xb4   : > { %340 = vst [vmem:[%s279_s10 + $0x8] sm:$0xff] %v338_v32 }
  0xb5 PF: > { %s14_s17 = sadd.s32 1, %s537_s17   ;;  %s637_s15 = smov %s533_s16 }
  0xb6   : > { %p11_p5 = scmp.ge.s32.totalorder %s14_s17, 6   ;;  %s638_s16 = smov %s640_s18 }
  0xb8   :  { %13 = sbr.rel (!%p11_p5) target bundleno = 2 (0x2), region = 72 }

// kernel: net6_forward.10
= control target key start
LH: loop header
LB: loop body
LE: loop exit
PB: predicated region body
PF: predicated region fallthrough
CT: control target
= control target key end

     0   :  { %s509_s15 = smov 0   ;;  %s511_s16 = smov 0   ;;  %s551_s0 = inlined_call_operand.vmem [shape: f32[4,64,128], index: 0, kind: input, shape index: {}]   ;;  %s552_s1 = inlined_call_operand.vmem [shape: f32[4,8,64], index: 1, kind: input, shape index: {}]   ;;  %s553_s2 = inlined_call_operand.vmem [shape: f32[8,1], index: 2, kind: input, shape index: {}]   ;;  %s554_s3 = inlined_call_operand.vmem [shape: f32[4,8,128], index: 3, kind: input, shape index: {}]   ;;  %s555_s4 = inlined_call_operand.vmem [shape: f32[4,8,128], index: 4, kind: output, shape index: {}]  }
   0x1   :  { %s513_s17 = smov 0  }
   0x2 LB: > { %s26_s18 = sadd.s32 1, %s477_s16  ;;  %p423_p0 = scmp.ge.s32.totalorder %s481_s17, 1  ;;  %s481_s17 = sphi %s513_s17, %s14_s17   ;;  %s477_s16 = sphi %s511_s16, %s557_s16   ;;  %s473_s15 = sphi %s509_s15, %s556_s15  }
   0x3   : > { %p28_p1 = scmp.ge.s32.totalorder %s26_s18, 4  ;;  %p204_p2 = scmp.lt.s32.totalorder %s481_s17, 5 }
   0x5   : > { %s559_s18 = smov (%p28_p1, %s26_s18), 0  ;;  %p205_p3 = pnand %p423_p0, %p204_p2 }
   0x6   : > { %p246_p4 = scmp.lt.s32.totalorder (!%p205_p3), %s473_s15, 3 }
   0x7   : > { %208 = sbr.rel (%p205_p3) target bundleno = 164 (0xa4), region = 36 }
   0xc   : > { %v281_v0 = vld [vmem:[%s553_s2] sm:$0xff]  ;;  %v483_v1 = vmov 0   ;;  %s561_s15 = smov (!%p246_p4, %s473_s15), 3  ;;  %vm287_vm0 = vcmask 523264  }
   0xd   : > { %458 = vset.pattern.permute.xlu0 %v483_v1  ;;  %s432_s21 = sshll.u32 %s561_s15, 6  ;;  %s426_s25 = sshll.u32 %s561_s15, 3 }
   0xe   : > { %284 = vperm.xlu0 %458, %v281_v0   ;;  %s253_s24 = scalar_lea.vmem %s551_s0, %s432_s21  ;;  %s257_s28 = scalar_lea.vmem %s552_s1, %s426_s25 }
   0xf   : > { %v280_v2 = vld [vmem:[%s253_s24 + $0x38] sm:$0xff]  ;;  %v279_v3 = vld [vmem:[%s253_s24 + $0x30] sm:$0xff]  ;;  %v278_v4 = vld [vmem:[%s253_s24 + $0x28] sm:$0xff]  ;;  %s264_s5 = scalar_lea.vmem %s554_s3, %s426_s25  ;;  %s271_s8 = scalar_lea.vmem %s555_s4, %s426_s25 }
  0x10   : > { %299 = vmatpush.msra.mxu0 %v280_v2  ;;  %v277_v5 = vld [vmem:[%s253_s24 + $0x20] sm:$0xff]  ;;  %v276_v6 = vld [vmem:[%s253_s24 + $0x18] sm:$0xff]  ;;  %v275_v7 = vld [vmem:[%s253_s24 + $0x10] sm:$0xff] }
  0x11   : > { %v274_v8 = vld [vmem:[%s253_s24 + $0x8] sm:$0xff]  ;;  %v273_v9 = vld [vmem:[%s253_s24] sm:$0xff] }
  0x12   : > { %300 = vmatpush.msra.mxu0 %v279_v3  ;;  %v272_v10 = vld [vmem:[%s257_s28] sm:$0xff] }
  0x13   : > { %v312_v14 = vld [vmem:[%s264_s5] sm:$0xff] }
  0x14   : > { %301 = vmatpush.msra.mxu0 %v278_v4 }
  0x16   : > { %302 = vmatpush.msra.mxu0 %v277_v5 }
  0x18   : > { %303 = vmatpush.msra.mxu0 %v276_v6 }
  0x1a   : > { %304 = vmatpush.msra.mxu0 %v275_v7 }
  0x1c   : > { %305 = vmatpush.msra.mxu0 %v274_v8 }
  0x1e   : > { %306 = vmatpush.msra.mxu0 %v273_v9 }
  0x1f   : > { %429 = vmatmul.msk.f32.vlgmr.msra.gmra.mxu0 %vm287_vm0, %v272_v10 }
  0x80   : > { %v285_v11 = vpop.permute.xlu0 %284 }
  0x9c   : > { %v308_v12 = vpop.f32.mrf.mxu0 }
  0x9d   : > { %v309_v13 = vadd.f32 %v308_v12, %v285_v11 }
  0x9f   : > { %v311_v15 = vmax.f32 %v309_v13, 0.0 }
  0xa1   : > { %v313_v16 = vadd.f32 %v312_v14, %v311_v15 }
  0xa3   : > { %314 = vst [vmem:[%s271_s8] sm:$0xff] %v313_v16 }
  0xa4 PF: > { %s14_s17 = sadd.s32 1, %s481_s17   ;;  %s556_s15 = smov %s477_s16 }
  0xa5   : > { %p11_p5 = scmp.ge.s32.totalorder %s14_s17, 6   ;;  %s557_s16 = smov %s559_s18 }
  0xa7   :  { %13 = sbr.rel (!%p11_p5) target bundleno = 2 (0x2), region = 72 }

// kernel: net6_forward.11
= control target key start
LH: loop header
LB: loop body
LE: loop exit
PB: predicated region body
PF: predicated region fallthrough
CT: control target
= control target key end

     0   :  { %s479_s12 = smov 0   ;;  %s481_s13 = smov 0   ;;  %s523_s0 = inlined_call_operand.vmem [shape: f32[4,32,256], index: 0, kind: input, shape index: {}]   ;;  %s524_s1 = inlined_call_operand.vmem [shape: f32[4,2,32], index: 1, kind: input, shape index: {}]   ;;  %s525_s2 = inlined_call_operand.vmem [shape: f32[2,1], index: 2, kind: input, shape index: {}]   ;;  %s526_s3 = inlined_call_operand.vmem [shape: f32[4,2,256], index: 3, kind: output, shape index: {}]  }
   0x1   :  { %s483_s14 = smov 0  }
   0x2 LB: > { %s25_s15 = sadd.s32 1, %s452_s13  ;;  %p396_p0 = scmp.ge.s32.totalorder %s456_s14, 1  ;;  %s456_s14 = sphi %s483_s14, %s13_s14   ;;  %s452_s13 = sphi %s481_s13, %s528_s13   ;;  %s448_s12 = sphi %s479_s12, %s527_s12  }
   0x3   : > { %p27_p1 = scmp.ge.s32.totalorder %s25_s15, 4  ;;  %p167_p2 = scmp.lt.s32.totalorder %s456_s14, 5 }
   0x5   : > { %s530_s15 = smov (%p27_p1, %s25_s15), 0  ;;  %p168_p3 = pnand %p396_p0, %p167_p2 }
   0x6   : > { %p204_p4 = scmp.lt.s32.totalorder (!%p168_p3), %s448_s12, 3 }
   0x7   : > { %171 = sbr.rel (%p168_p3) target bundleno = 155 (0x9b), region = 32 }
   0xc   : > { %v236_v0 = vld [vmem:[%s525_s2] sm:$0x3]  ;;  %v458_v1 = vmov 0   ;;  %s532_s12 = smov (!%p204_p4, %s448_s12), 3  ;;  %vm242_vm0 = vcmask 261120   ;;  %vm289_vm1 = vcmask 1041408  }
   0xd   : > { %433 = vset.pattern.permute.xlu0 %v458_v1  ;;  %s406_s18 = sshll.u32 %s532_s12, 6  ;;  %s399_s22 = sshll.u32 %s532_s12, 1 }
   0xe   : > { %239 = vperm.xlu0 %433, %v236_v0   ;;  %s211_s21 = scalar_lea.vmem %s523_s0, %s406_s18  ;;  %s216_s25 = scalar_lea.vmem %s524_s1, %s399_s22 }
   0xf   : > { %v234_v2 = vld [vmem:[%s211_s21 + $0x30] sm:$0xff]  ;;  %v235_v3 = vld [vmem:[%s211_s21 + $0x38] sm:$0xff]  ;;  %v232_v4 = vld [vmem:[%s211_s21 + $0x20] sm:$0xff]  ;;  %s407_s26 = sshll.u32 %s532_s12, 2 }
  0x10   : > { %258 = vmatpush.msra.mxu0 %v234_v2  ;;  %278 = vmatpush.msra.mxu1 %v235_v3  ;;  %v233_v5 = vld [vmem:[%s211_s21 + $0x28] sm:$0xff]  ;;  %v230_v6 = vld [vmem:[%s211_s21 + $0x10] sm:$0xff]  ;;  %v231_v7 = vld [vmem:[%s211_s21 + $0x18] sm:$0xff]  ;;  %s225_s29 = scalar_lea.vmem %s526_s3, %s407_s26 }
  0x11   : > { %v228_v8 = vld [vmem:[%s211_s21] sm:$0xff]  ;;  %v229_v9 = vld [vmem:[%s211_s21 + $0x8] sm:$0xff] }
  0x12   : > { %259 = vmatpush.msra.mxu0 %v232_v4  ;;  %279 = vmatpush.msra.mxu1 %v233_v5  ;;  %v227_v10 = vld [vmem:[%s216_s25] sm:$0x3] }
  0x14   : > { %260 = vmatpush.msra.mxu0 %v230_v6  ;;  %280 = vmatpush.msra.mxu1 %v231_v7 }
  0x16   : > { %261 = vmatpush.msra.mxu0 %v228_v8  ;;  %281 = vmatpush.msra.mxu1 %v229_v9 }
  0x17   : > { %402 = vmatmul.msk.f32.vlgmr.msra.gmra.mxu0 %vm242_vm0, %v227_v10  ;;  %403 = vmatmul.msk.f32.vlgmr.msra.gmra.mxu1 %vm242_vm0, %v227_v10 }
  0x80   : > { %v240_v11 = vpop.permute.xlu0 %239 }
  0x94   : > { %v263_v12 = vpop.f32.mrf.mxu0  ;;  %v283_v13 = vpop.f32.mrf.mxu1 }
  0x95   : > { %v284_v14 = vadd.f32 %v283_v13, %v240_v11  ;;  %v264_v15 = vadd.f32 %v263_v12, %v240_v11 }
  0x97   : > { %v288_v16 = vrot.slane %v284_v14, 6 }
  0x99   : > { %v290_v17 = vsel %vm289_vm1, %v264_v15, %v288_v16 }
  0x9a   : > { %292 = vst [vmem:[%s225_s29] sm:$0xf] %v290_v17 }
  0x9b PF: > { %s13_s14 = sadd.s32 1, %s456_s14   ;;  %s527_s12 = smov %s452_s13 }
  0x9c   : > { %p10_p5 = scmp.ge.s32.totalorder %s13_s14, 6   ;;  %s528_s13 = smov %s530_s15 }
  0x9e   :  { %12 = sbr.rel (!%p10_p5) target bundleno = 2 (0x2), region = 65 }

</bundles_post_ra>
